<compile_context>
chip_gen: v5e
topology: v5e:2x2
jax: 0.10.0
libtpu: 0.0.40
codegen_flags: <defaults>
</compile_context>

<pallas_src>
import functools
import numpy as np
import jax
import jax.numpy as jnp
from jax.experimental import pallas as pl
from jax.experimental.pallas import tpu as pltpu

EPS = 1e-7
_PAD_LOGIT = -1e4          # BCE(sigmoid(-1e4), 0) == 0 exactly in f32
_MAX_CONF_TILE_ROWS = 1024 # (1024, 128) f32 tile = 512 KiB per buffer


def _atan_pos(x):
    # arctan for x > 0 (aspect ratios). Mosaic has no atan lowering, so use range reduction +
    # A&S 4.4.47 polynomial (|err| ~ 1e-5, negligible inside the CIoU "v" term).
    inv = x > 1.0
    t = jnp.where(inv, 1.0 / x, x)
    t2 = t * t
    p = t * (0.9998660 + t2 * (-0.3302995 + t2 * (0.1801410 + t2 * (-0.0851330 + t2 * 0.0208351))))
    return jnp.where(inv, (jnp.pi / 2.0) - p, p)


def _bce_from_logits(x, t):
    # numerically stable BCE(sigmoid(x), t) == max(x,0) - x*t + log(1 + exp(-|x|))
    return jnp.maximum(x, 0.0) - x * t + jnp.log(1.0 + jnp.exp(-jnp.abs(x)))


# ---------------------------------------------------------------------------
# Kernel 1: matched-target losses (transposed layout: matches on the 128-lane axis)
#   inputs : pred (C, Np), anchors (2, Np), gt xywh (4, Np), one-hot (NC, Np),
#            valid (1, Np), dedup (1, Np)
#   outputs: cls BCE sum, (1 - CIoU) sum, sparse conf correction sum  (all (1,1))
# ---------------------------------------------------------------------------
def _matched_targets_kernel(pred_ref, anc_ref, tgt_ref, oh_ref, valid_ref, dedup_ref,
                            cls_ref, box_ref, corr_ref):
    pred = pred_ref[...]            # (C, Np)
    valid = valid_ref[...]          # (1, Np)  1.0 for real matches, 0.0 for padding
    dedup = dedup_ref[...]          # (1, Np)  1.0 only for the "winning" duplicate

    # --- classification BCE (sum over valid matches x classes) ---
    bce_cls = _bce_from_logits(pred[5:, :], oh_ref[...])
    cls_ref[...] = jnp.reshape(jnp.sum(bce_cls * valid), (1, 1))

    # --- decode predicted boxes (xywh, grid units) ---
    anc = anc_ref[...]
    px = jax.nn.sigmoid(pred[0:1, :])
    py = jax.nn.sigmoid(pred[1:2, :])
    pw = jnp.exp(pred[2:3, :]) * anc[0:1, :]
    ph = jnp.exp(pred[3:4, :]) * anc[1:2, :]
    tgt = tgt_ref[...]
    tx, ty = tgt[0:1, :], tgt[1:2, :]
    tw, th = tgt[2:3, :], tgt[3:4, :]

    p_x1, p_x2 = px - 0.5 * pw, px + 0.5 * pw
    p_y1, p_y2 = py - 0.5 * ph, py + 0.5 * ph
    t_x1, t_x2 = tx - 0.5 * tw, tx + 0.5 * tw
    t_y1, t_y2 = ty - 0.5 * th, ty + 0.5 * th

    inter_w = jnp.maximum(jnp.minimum(p_x2, t_x2) - jnp.maximum(p_x1, t_x1), 0.0)
    inter_h = jnp.maximum(jnp.minimum(p_y2, t_y2) - jnp.maximum(p_y1, t_y1), 0.0)
    inter = inter_w * inter_h
    union = pw * ph + tw * th - inter + EPS
    iou = inter / union

    # CIoU terms
    cw = jnp.maximum(p_x2, t_x2) - jnp.minimum(p_x1, t_x1)
    ch = jnp.maximum(p_y2, t_y2) - jnp.minimum(p_y1, t_y1)
    c2 = cw * cw + ch * ch + EPS
    dx = tx - px
    dy = ty - py
    rho2 = dx * dx + dy * dy
    dar = _atan_pos(tw / th) - _atan_pos(pw / ph)
    v = (4.0 / (jnp.pi * jnp.pi)) * dar * dar
    alpha = v / (v - iou + (1.0 + EPS))
    ciou = iou - (rho2 / c2 + v * alpha)

    box_ref[...] = jnp.reshape(jnp.sum((1.0 - ciou) * valid), (1, 1))

    # --- sparse conf correction: BCE(x, iou) - BCE(x, 0) == -x * iou (exact identity) ---
    conf_logit = pred[4:5, :]
    corr_ref[...] = jnp.reshape(jnp.sum(dedup * (-conf_logit * iou)), (1, 1))


# ---------------------------------------------------------------------------
# Kernel 2: objectness BCE-against-zero (softplus) sum over the conf plane.
#   Lane-dense (rows, 128) input; elementwise VMEM accumulator, single final reduce.
# ---------------------------------------------------------------------------
def _conf_bce0_sum_kernel(x_ref, out_ref, acc_ref, *, total_rows):
    i = pl.program_id(0)
    tr = x_ref.shape[0]

    @pl.when(i == 0)
    def _():
        acc_ref[...] = jnp.zeros_like(acc_ref)

    x = x_ref[...]
    # Mask the (possibly garbage-padded) tail block rows.
    row = jax.lax.broadcasted_iota(jnp.int32, x.shape, 0) + i * tr
    x = jnp.where(row < total_rows, x, _PAD_LOGIT)
    acc_ref[...] = acc_ref[...] + _bce_from_logits(x, 0.0)

    @pl.when(i == pl.num_programs(0) - 1)
    def _():
        out_ref[...] = jnp.reshape(jnp.sum(acc_ref[...]), (1, 1))


def _conf_bce0_sum(pred):
    """sum over all cells of BCE(sigmoid(conf_logit), 0). `pred` is (B,A,H,W,5+NC)."""
    B, A, H, W, C = pred.shape
    m = B * A * H * W
    conf = pred[..., 4].reshape(-1)
    mp = ((m + 127) // 128) * 128
    if mp > m:
        conf = jnp.concatenate(
            [conf, jnp.full((mp - m,), _PAD_LOGIT, jnp.float32)])
    rows = mp // 128
    x2d = conf.reshape(rows, 128)
    tr = rows if rows <= _MAX_CONF_TILE_ROWS else _MAX_CONF_TILE_ROWS

    out = pl.pallas_call(
        functools.partial(_conf_bce0_sum_kernel, total_rows=rows),
        out_shape=jax.ShapeDtypeStruct((1, 1), jnp.float32),
        grid=(pl.cdiv(rows, tr),),
        in_specs=[pl.BlockSpec((tr, 128), lambda i: (i, 0))],
        out_specs=pl.BlockSpec((1, 1), lambda i: (0, 0)),
        scratch_shapes=[pltpu.VMEM((tr, 128), jnp.float32)],
        compiler_params=pltpu.CompilerParams(dimension_semantics=("arbitrary",)),
    )(x2d)
    return out[0, 0]


# ---------------------------------------------------------------------------
# Per-level device-side work, fused under jit (shapes are static -> cached).
# ---------------------------------------------------------------------------
@jax.jit
def _level_losses_matched(pred, b_idx, a_idx, g_y, g_x,
                          anc_t, tgt_t, oh_t, valid_t, dedup_t, n_matches):
    B, A, H, W, C = pred.shape
    nc = C - 5
    # gather matched rows (Np, C) -> transpose to lane-dense (C, Np)
    rows_t = jnp.transpose(pred[b_idx, a_idx, g_y, g_x]).astype(jnp.float32)

    cls_s, box_s, corr_s = pl.pallas_call(
        _matched_targets_kernel,
        out_shape=(jax.ShapeDtypeStruct((1, 1), jnp.float32),
                   jax.ShapeDtypeStruct((1, 1), jnp.float32),
                   jax.ShapeDtypeStruct((1, 1), jnp.float32)),
    )(rows_t, anc_t, tgt_t, oh_t, valid_t, dedup_t)

    conf_sum = _conf_bce0_sum(pred)

    m = float(B * A * H * W)
    loss_cls = cls_s[0, 0] / (n_matches * nc)
    loss_box = box_s[0, 0] / n_matches
    loss_conf = (conf_sum + corr_s[0, 0]) / m
    return loss_cls, loss_box, loss_conf


@jax.jit
def _level_loss_conf_only(pred):
    B, A, H, W, C = pred.shape
    return _conf_bce0_sum(pred) / float(B * A * H * W)


# ---------------------------------------------------------------------------
# Host-side target building (ragged / data-dependent -> NumPy glue)
# ---------------------------------------------------------------------------
def _build_target_level(pred_shape, y_true, anchors, stride):
    B, A, H, W, C = pred_shape
    anchors = anchors.astype(np.float32) / float(stride)           # (A, 2) in grid units
    feature_whwh = np.array([W, H, W, H], dtype=np.float32)
    target = y_true.astype(np.float32).copy()
    target[:, 2:6] = y_true[:, 2:6] * feature_whwh
    T = target.shape[0]

    wh_sim = target[:, None, 4:6] / anchors[None, :, :]            # (T, A, 2)
    sim_mask = np.maximum(wh_sim, 1.0 / wh_sim).max(axis=2) < 4.0  # (T, A)

    tla = np.repeat(target[:, None, :], A, axis=1)                 # (T, A, 6)
    a_ids = np.tile(np.arange(A, dtype=np.float32)[None, :], (T, 1))
    twa = np.concatenate([tla, a_ids[:, :, None]], axis=2)         # (T, A, 7)
    matches = twa[sim_mask]                                        # (N, 7), row-major over (t, a)

    b_idx = matches[:, 0].astype(np.int32)
    cls_idx = matches[:, 1].astype(np.int32)
    xy = matches[:, 2:4]
    wh = matches[:, 4:6]
    a_idx = matches[:, 6].astype(np.int32)
    gxy = np.floor(xy).astype(np.int32)
    off = (xy - gxy.astype(np.float32))                            # offset BEFORE clamp (as in torch)
    gxy[:, 0] = np.clip(gxy[:, 0], 0, W - 1)
    gxy[:, 1] = np.clip(gxy[:, 1], 0, H - 1)
    gt_xywh = np.concatenate([off, wh], axis=1).astype(np.float32)
    m_anchors = anchors[a_idx]
    return b_idx, gxy, a_idx, cls_idx, gt_xywh, m_anchors


# ---------------------------------------------------------------------------
# Loss wrapper (mirrors Yolov3Loss.forward)
# ---------------------------------------------------------------------------
class Yolov3LossPallas:
    def __init__(self, anchors_per_level, strides_per_level,
                 ratio_box, ratio_conf, ratio_cls, num_classes):
        self.anchors_per_level = [np.asarray(a, np.float32) for a in anchors_per_level]
        self.strides_per_level = list(strides_per_level)
        self.ratio_box = float(ratio_box)
        self.ratio_conf = float(ratio_conf)
        self.ratio_cls = float(ratio_cls)
        self.nc = int(num_classes)

    def __call__(self, y_pred, y_true_np):
        loss_cls = jnp.float32(0.0)
        loss_box = jnp.float32(0.0)
        loss_conf = jnp.float32(0.0)
        bs = int(y_pred[0].shape[0])

        for layer_idx, pred in enumerate(y_pred):
            B, A, H, W, C = pred.shape
            nc = C - 5
            b_idx, gxy, a_idx, cls_idx, gt_xywh, m_anchors = _build_target_level(
                pred.shape, y_true_np, self.anchors_per_level[layer_idx],
                self.strides_per_level[layer_idx])
            N = int(b_idx.shape[0])

            if N > 0:
                Np = ((N + 127) // 128) * 128          # bucket -> stable jit cache keys, lane-aligned

                bi = np.zeros(Np, np.int32); bi[:N] = b_idx
                ai = np.zeros(Np, np.int32); ai[:N] = a_idx
                gy = np.zeros(Np, np.int32); gy[:N] = gxy[:, 1]
                gx = np.zeros(Np, np.int32); gx[:N] = gxy[:, 0]

                anc_t = np.ones((2, Np), np.float32); anc_t[:, :N] = m_anchors.T
                tgt_t = np.tile(np.array([[0.5], [0.5], [1.0], [1.0]], np.float32), (1, Np))
                tgt_t[:, :N] = gt_xywh.T
                oh_t = np.zeros((nc, Np), np.float32); oh_t[cls_idx, np.arange(N)] = 1.0
                valid_t = np.zeros((1, Np), np.float32); valid_t[0, :N] = 1.0

                # last-write-wins dedup of duplicate matched cells (torch scatter convention)
                lin = ((b_idx.astype(np.int64) * A + a_idx) * H + gxy[:, 1]) * W + gxy[:, 0]
                uniq, inv = np.unique(lin, return_inverse=True)
                winner = np.full(uniq.shape[0], -1, np.int64)
                np.maximum.at(winner, inv, np.arange(N, dtype=np.int64))
                dedup = np.zeros(N, np.float32); dedup[winner] = 1.0
                dedup_t = np.zeros((1, Np), np.float32); dedup_t[0, :N] = dedup

                cls_l, box_l, conf_l = _level_losses_matched(
                    pred, bi, ai, gy, gx, anc_t, tgt_t, oh_t, valid_t, dedup_t,
                    np.float32(N))
                loss_cls = loss_cls + cls_l
                loss_box = loss_box + box_l
                loss_conf = loss_conf + conf_l
            else:
                loss_conf = loss_conf + _level_loss_conf_only(pred)

        total = (self.ratio_box * loss_box
                 + self.ratio_conf * loss_conf
                 + self.ratio_cls * loss_cls) * bs
        return jnp.reshape(total, (1,))


if __name__ == "__main__":
    key = jax.random.PRNGKey(0)
    B, A, NC = 2, 3, 4
    strides = [16, 8]
    feats = [(8, 8), (16, 16)]   # (H, W) per level for a 128x128 input image
    anchors = [np.array([[30., 40.], [60., 50.], [90., 100.]], np.float32),
               np.array([[10., 14.], [16., 30.], [33., 23.]], np.float32)]

    y_pred = []
    for (H, W) in feats:
        key, sub = jax.random.split(key)
        y_pred.append(0.5 * jax.random.normal(sub, (B, A, H, W, 5 + NC), dtype=jnp.float32))

    # [batch_idx, class_idx, x_center, y_center, w, h]  (normalized coords)
    y_true = np.array([
        [0, 1, 0.50, 0.50, 0.30, 0.40],
        [0, 3, 0.25, 0.30, 0.20, 0.25],
        [1, 0, 0.70, 0.60, 0.45, 0.35],
        [1, 2, 0.40, 0.80, 0.15, 0.20],
        [1, 1, 0.60, 0.20, 0.35, 0.55],
    ], dtype=np.float32)

    loss_fn = Yolov3LossPallas(anchors, strides,
                               ratio_box=0.05, ratio_conf=1.0, ratio_cls=0.5,
                               num_classes=NC)
    out = loss_fn(y_pred, y_true)
    jax.block_until_ready(out)
    assert out.shape == (1,) and bool(jnp.isfinite(out[0]))
    print("KERNEL_OK")
</pallas_src>

<mosaic_0001>
module attributes {stable_mosaic.version = 11 : i64} {
  func.func @_matched_targets_kernel(%arg0: memref<9x128xf32, #tpu.memory_space<vmem>>, %arg1: memref<2x128xf32, #tpu.memory_space<vmem>>, %arg2: memref<4x128xf32, #tpu.memory_space<vmem>>, %arg3: memref<4x128xf32, #tpu.memory_space<vmem>>, %arg4: memref<1x128xf32, #tpu.memory_space<vmem>>, %arg5: memref<1x128xf32, #tpu.memory_space<vmem>>, %arg6: memref<1x1xf32, #tpu.memory_space<vmem>>, %arg7: memref<1x1xf32, #tpu.memory_space<vmem>>, %arg8: memref<1x1xf32, #tpu.memory_space<vmem>>) attributes {dimension_semantics = [], scalar_prefetch = 0 : i64, scratch_operands = 0 : i64, tpu.core_type = #tpu.core_type<tc>} {
    %c0 = arith.constant 0 : index
    %c0_0 = arith.constant 0 : index
    %0 = vector.load %arg0[%c0, %c0_0] : memref<9x128xf32, #tpu.memory_space<vmem>>, vector<9x128xf32>
    %c0_1 = arith.constant 0 : index
    %c0_2 = arith.constant 0 : index
    %1 = vector.load %arg4[%c0_1, %c0_2] : memref<1x128xf32, #tpu.memory_space<vmem>>, vector<1x128xf32>
    %c0_3 = arith.constant 0 : index
    %c0_4 = arith.constant 0 : index
    %2 = vector.load %arg5[%c0_3, %c0_4] : memref<1x128xf32, #tpu.memory_space<vmem>>, vector<1x128xf32>
    %3 = vector.extract_strided_slice %0 {offsets = [5, 0], sizes = [4, 128], strides = [1, 1]} : vector<9x128xf32> to vector<4x128xf32>
    %c0_5 = arith.constant 0 : index
    %c0_6 = arith.constant 0 : index
    %4 = vector.load %arg3[%c0_5, %c0_6] : memref<4x128xf32, #tpu.memory_space<vmem>>, vector<4x128xf32>
    %cst = arith.constant 0.000000e+00 : f32
    %5 = vector.broadcast %cst : f32 to vector<4x128xf32>
    %6 = arith.maximumf %3, %5 : vector<4x128xf32>
    %7 = arith.mulf %3, %4 : vector<4x128xf32>
    %8 = arith.subf %6, %7 : vector<4x128xf32>
    %9 = math.absf %3 : vector<4x128xf32>
    %cst_7 = arith.constant 0.000000e+00 : f32
    %10 = vector.broadcast %cst_7 : f32 to vector<4x128xf32>
    %11 = arith.subf %10, %9 : vector<4x128xf32>
    %12 = math.exp %11 : vector<4x128xf32>
    %cst_8 = arith.constant 1.000000e+00 : f32
    %13 = vector.broadcast %cst_8 : f32 to vector<4x128xf32>
    %14 = arith.addf %13, %12 : vector<4x128xf32>
    %15 = math.log %14 : vector<4x128xf32>
    %16 = arith.addf %8, %15 : vector<4x128xf32>
    %17 = vector.broadcast %1 : vector<1x128xf32> to vector<4x128xf32>
    %18 = arith.mulf %16, %17 : vector<4x128xf32>
    %19 = vector.shape_cast %18 : vector<4x128xf32> to vector<1x4x128xf32>
    %cst_9 = arith.constant dense<0.000000e+00> : vector<1xf32>
    %20 = vector.multi_reduction <add>, %19, %cst_9 [1, 2] : vector<1x4x128xf32> to vector<1xf32>
    %21 = vector.shape_cast %20 : vector<1xf32> to vector<1x1x1xf32>
    %22 = vector.extract %21[0, 0, 0] : f32 from vector<1x1x1xf32>
    %23 = vector.broadcast %22 : f32 to vector<1x1xf32>
    %c0_10 = arith.constant 0 : index
    %c0_11 = arith.constant 0 : index
    %24 = vector.load %arg6[%c0_10, %c0_11] : memref<1x1xf32, #tpu.memory_space<vmem>>, vector<1x1xf32>
    tpu.vector_store %arg6[%c0_10, %c0_11], %23 {strides = array<i32>} : memref<1x1xf32, #tpu.memory_space<vmem>>, vector<1x1xf32>,
    %c0_12 = arith.constant 0 : index
    %c0_13 = arith.constant 0 : index
    %25 = vector.load %arg1[%c0_12, %c0_13] : memref<2x128xf32, #tpu.memory_space<vmem>>, vector<2x128xf32>
    %26 = vector.extract_strided_slice %0 {offsets = [0, 0], sizes = [1, 128], strides = [1, 1]} : vector<9x128xf32> to vector<1x128xf32>
    %27 = arith.negf %26 : vector<1x128xf32>
    %28 = math.exp %27 : vector<1x128xf32>
    %cst_14 = arith.constant 1.000000e+00 : f32
    %29 = vector.broadcast %cst_14 : f32 to vector<1x128xf32>
    %30 = arith.addf %29, %28 : vector<1x128xf32>
    %31 = arith.divf %29, %30 : vector<1x128xf32>
    %32 = vector.extract_strided_slice %0 {offsets = [1, 0], sizes = [1, 128], strides = [1, 1]} : vector<9x128xf32> to vector<1x128xf32>
    %33 = arith.negf %32 : vector<1x128xf32>
    %34 = math.exp %33 : vector<1x128xf32>
    %cst_15 = arith.constant 1.000000e+00 : f32
    %35 = vector.broadcast %cst_15 : f32 to vector<1x128xf32>
    %36 = arith.addf %35, %34 : vector<1x128xf32>
    %37 = arith.divf %35, %36 : vector<1x128xf32>
    %38 = vector.extract_strided_slice %0 {offsets = [2, 0], sizes = [1, 128], strides = [1, 1]} : vector<9x128xf32> to vector<1x128xf32>
    %39 = math.exp %38 : vector<1x128xf32>
    %40 = vector.extract_strided_slice %25 {offsets = [0, 0], sizes = [1, 128], strides = [1, 1]} : vector<2x128xf32> to vector<1x128xf32>
    %41 = arith.mulf %39, %40 : vector<1x128xf32>
    %42 = vector.extract_strided_slice %0 {offsets = [3, 0], sizes = [1, 128], strides = [1, 1]} : vector<9x128xf32> to vector<1x128xf32>
    %43 = math.exp %42 : vector<1x128xf32>
    %44 = vector.extract_strided_slice %25 {offsets = [1, 0], sizes = [1, 128], strides = [1, 1]} : vector<2x128xf32> to vector<1x128xf32>
    %45 = arith.mulf %43, %44 : vector<1x128xf32>
    %c0_16 = arith.constant 0 : index
    %c0_17 = arith.constant 0 : index
    %46 = vector.load %arg2[%c0_16, %c0_17] : memref<4x128xf32, #tpu.memory_space<vmem>>, vector<4x128xf32>
    %47 = vector.extract_strided_slice %46 {offsets = [0, 0], sizes = [1, 128], strides = [1, 1]} : vector<4x128xf32> to vector<1x128xf32>
    %48 = vector.extract_strided_slice %46 {offsets = [1, 0], sizes = [1, 128], strides = [1, 1]} : vector<4x128xf32> to vector<1x128xf32>
    %49 = vector.extract_strided_slice %46 {offsets = [2, 0], sizes = [1, 128], strides = [1, 1]} : vector<4x128xf32> to vector<1x128xf32>
    %50 = vector.extract_strided_slice %46 {offsets = [3, 0], sizes = [1, 128], strides = [1, 1]} : vector<4x128xf32> to vector<1x128xf32>
    %cst_18 = arith.constant 5.000000e-01 : f32
    %51 = vector.broadcast %cst_18 : f32 to vector<1x128xf32>
    %52 = arith.mulf %51, %41 : vector<1x128xf32>
    %53 = arith.subf %31, %52 : vector<1x128xf32>
    %cst_19 = arith.constant 5.000000e-01 : f32
    %54 = vector.broadcast %cst_19 : f32 to vector<1x128xf32>
    %55 = arith.mulf %54, %41 : vector<1x128xf32>
    %56 = arith.addf %31, %55 : vector<1x128xf32>
    %cst_20 = arith.constant 5.000000e-01 : f32
    %57 = vector.broadcast %cst_20 : f32 to vector<1x128xf32>
    %58 = arith.mulf %57, %45 : vector<1x128xf32>
    %59 = arith.subf %37, %58 : vector<1x128xf32>
    %cst_21 = arith.constant 5.000000e-01 : f32
    %60 = vector.broadcast %cst_21 : f32 to vector<1x128xf32>
    %61 = arith.mulf %60, %45 : vector<1x128xf32>
    %62 = arith.addf %37, %61 : vector<1x128xf32>
    %cst_22 = arith.constant 5.000000e-01 : f32
    %63 = vector.broadcast %cst_22 : f32 to vector<1x128xf32>
    %64 = arith.mulf %63, %49 : vector<1x128xf32>
    %65 = arith.subf %47, %64 : vector<1x128xf32>
    %cst_23 = arith.constant 5.000000e-01 : f32
    %66 = vector.broadcast %cst_23 : f32 to vector<1x128xf32>
    %67 = arith.mulf %66, %49 : vector<1x128xf32>
    %68 = arith.addf %47, %67 : vector<1x128xf32>
    %cst_24 = arith.constant 5.000000e-01 : f32
    %69 = vector.broadcast %cst_24 : f32 to vector<1x128xf32>
    %70 = arith.mulf %69, %50 : vector<1x128xf32>
    %71 = arith.subf %48, %70 : vector<1x128xf32>
    %cst_25 = arith.constant 5.000000e-01 : f32
    %72 = vector.broadcast %cst_25 : f32 to vector<1x128xf32>
    %73 = arith.mulf %72, %50 : vector<1x128xf32>
    %74 = arith.addf %48, %73 : vector<1x128xf32>
    %75 = arith.minimumf %56, %68 : vector<1x128xf32>
    %76 = arith.maximumf %53, %65 : vector<1x128xf32>
    %77 = arith.subf %75, %76 : vector<1x128xf32>
    %cst_26 = arith.constant 0.000000e+00 : f32
    %78 = vector.broadcast %cst_26 : f32 to vector<1x128xf32>
    %79 = arith.maximumf %77, %78 : vector<1x128xf32>
    %80 = arith.minimumf %62, %74 : vector<1x128xf32>
    %81 = arith.maximumf %59, %71 : vector<1x128xf32>
    %82 = arith.subf %80, %81 : vector<1x128xf32>
    %cst_27 = arith.constant 0.000000e+00 : f32
    %83 = vector.broadcast %cst_27 : f32 to vector<1x128xf32>
    %84 = arith.maximumf %82, %83 : vector<1x128xf32>
    %85 = arith.mulf %79, %84 : vector<1x128xf32>
    %86 = arith.mulf %41, %45 : vector<1x128xf32>
    %87 = arith.mulf %49, %50 : vector<1x128xf32>
    %88 = arith.addf %86, %87 : vector<1x128xf32>
    %89 = arith.subf %88, %85 : vector<1x128xf32>
    %cst_28 = arith.constant 1.000000e-07 : f32
    %90 = vector.broadcast %cst_28 : f32 to vector<1x128xf32>
    %91 = arith.addf %89, %90 : vector<1x128xf32>
    %92 = arith.divf %85, %91 : vector<1x128xf32>
    %93 = arith.maximumf %56, %68 : vector<1x128xf32>
    %94 = arith.minimumf %53, %65 : vector<1x128xf32>
    %95 = arith.subf %93, %94 : vector<1x128xf32>
    %96 = arith.maximumf %62, %74 : vector<1x128xf32>
    %97 = arith.minimumf %59, %71 : vector<1x128xf32>
    %98 = arith.subf %96, %97 : vector<1x128xf32>
    %99 = arith.mulf %95, %95 : vector<1x128xf32>
    %100 = arith.mulf %98, %98 : vector<1x128xf32>
    %101 = arith.addf %99, %100 : vector<1x128xf32>
    %cst_29 = arith.constant 1.000000e-07 : f32
    %102 = vector.broadcast %cst_29 : f32 to vector<1x128xf32>
    %103 = arith.addf %101, %102 : vector<1x128xf32>
    %104 = arith.subf %47, %31 : vector<1x128xf32>
    %105 = arith.subf %48, %37 : vector<1x128xf32>
    %106 = arith.mulf %104, %104 : vector<1x128xf32>
    %107 = arith.mulf %105, %105 : vector<1x128xf32>
    %108 = arith.addf %106, %107 : vector<1x128xf32>
    %109 = arith.divf %49, %50 : vector<1x128xf32>
    %cst_30 = arith.constant 1.000000e+00 : f32
    %110 = vector.broadcast %cst_30 : f32 to vector<1x128xf32>
    %111 = arith.cmpf ogt, %109, %110 : vector<1x128xf32>
    %cst_31 = arith.constant 1.000000e+00 : f32
    %112 = vector.broadcast %cst_31 : f32 to vector<1x128xf32>
    %113 = arith.divf %112, %109 : vector<1x128xf32>
    %114 = arith.select %111, %113, %109 : vector<1x128xi1>, vector<1x128xf32>
    %115 = arith.mulf %114, %114 : vector<1x128xf32>
    %cst_32 = arith.constant 2.083510e-02 : f32
    %116 = vector.broadcast %cst_32 : f32 to vector<1x128xf32>
    %117 = arith.mulf %115, %116 : vector<1x128xf32>
    %cst_33 = arith.constant -8.513300e-02 : f32
    %118 = vector.broadcast %cst_33 : f32 to vector<1x128xf32>
    %119 = arith.addf %118, %117 : vector<1x128xf32>
    %120 = arith.mulf %115, %119 : vector<1x128xf32>
    %cst_34 = arith.constant 1.801410e-01 : f32
    %121 = vector.broadcast %cst_34 : f32 to vector<1x128xf32>
    %122 = arith.addf %121, %120 : vector<1x128xf32>
    %123 = arith.mulf %115, %122 : vector<1x128xf32>
    %cst_35 = arith.constant -0.330299497 : f32
    %124 = vector.broadcast %cst_35 : f32 to vector<1x128xf32>
    %125 = arith.addf %124, %123 : vector<1x128xf32>
    %126 = arith.mulf %115, %125 : vector<1x128xf32>
    %cst_36 = arith.constant 9.998660e-01 : f32
    %127 = vector.broadcast %cst_36 : f32 to vector<1x128xf32>
    %128 = arith.addf %127, %126 : vector<1x128xf32>
    %129 = arith.mulf %114, %128 : vector<1x128xf32>
    %cst_37 = arith.constant 1.57079637 : f32
    %130 = vector.broadcast %cst_37 : f32 to vector<1x128xf32>
    %131 = arith.subf %130, %129 : vector<1x128xf32>
    %132 = arith.select %111, %131, %129 : vector<1x128xi1>, vector<1x128xf32>
    %133 = arith.divf %41, %45 : vector<1x128xf32>
    %cst_38 = arith.constant 1.000000e+00 : f32
    %134 = vector.broadcast %cst_38 : f32 to vector<1x128xf32>
    %135 = arith.cmpf ogt, %133, %134 : vector<1x128xf32>
    %cst_39 = arith.constant 1.000000e+00 : f32
    %136 = vector.broadcast %cst_39 : f32 to vector<1x128xf32>
    %137 = arith.divf %136, %133 : vector<1x128xf32>
    %138 = arith.select %135, %137, %133 : vector<1x128xi1>, vector<1x128xf32>
    %139 = arith.mulf %138, %138 : vector<1x128xf32>
    %cst_40 = arith.constant 2.083510e-02 : f32
    %140 = vector.broadcast %cst_40 : f32 to vector<1x128xf32>
    %141 = arith.mulf %139, %140 : vector<1x128xf32>
    %cst_41 = arith.constant -8.513300e-02 : f32
    %142 = vector.broadcast %cst_41 : f32 to vector<1x128xf32>
    %143 = arith.addf %142, %141 : vector<1x128xf32>
    %144 = arith.mulf %139, %143 : vector<1x128xf32>
    %cst_42 = arith.constant 1.801410e-01 : f32
    %145 = vector.broadcast %cst_42 : f32 to vector<1x128xf32>
    %146 = arith.addf %145, %144 : vector<1x128xf32>
    %147 = arith.mulf %139, %146 : vector<1x128xf32>
    %cst_43 = arith.constant -0.330299497 : f32
    %148 = vector.broadcast %cst_43 : f32 to vector<1x128xf32>
    %149 = arith.addf %148, %147 : vector<1x128xf32>
    %150 = arith.mulf %139, %149 : vector<1x128xf32>
    %cst_44 = arith.constant 9.998660e-01 : f32
    %151 = vector.broadcast %cst_44 : f32 to vector<1x128xf32>
    %152 = arith.addf %151, %150 : vector<1x128xf32>
    %153 = arith.mulf %138, %152 : vector<1x128xf32>
    %cst_45 = arith.constant 1.57079637 : f32
    %154 = vector.broadcast %cst_45 : f32 to vector<1x128xf32>
    %155 = arith.subf %154, %153 : vector<1x128xf32>
    %156 = arith.select %135, %155, %153 : vector<1x128xi1>, vector<1x128xf32>
    %157 = arith.subf %132, %156 : vector<1x128xf32>
    %cst_46 = arith.constant 0.405284733 : f32
    %158 = vector.broadcast %cst_46 : f32 to vector<1x128xf32>
    %159 = arith.mulf %158, %157 : vector<1x128xf32>
    %160 = arith.mulf %159, %157 : vector<1x128xf32>
    %161 = arith.subf %160, %92 : vector<1x128xf32>
    %cst_47 = arith.constant 1.00000012 : f32
    %162 = vector.broadcast %cst_47 : f32 to vector<1x128xf32>
    %163 = arith.addf %161, %162 : vector<1x128xf32>
    %164 = arith.divf %160, %163 : vector<1x128xf32>
    %165 = arith.divf %108, %103 : vector<1x128xf32>
    %166 = arith.mulf %160, %164 : vector<1x128xf32>
    %167 = arith.addf %165, %166 : vector<1x128xf32>
    %168 = arith.subf %92, %167 : vector<1x128xf32>
    %cst_48 = arith.constant 1.000000e+00 : f32
    %169 = vector.broadcast %cst_48 : f32 to vector<1x128xf32>
    %170 = arith.subf %169, %168 : vector<1x128xf32>
    %171 = arith.mulf %170, %1 : vector<1x128xf32>
    %172 = vector.shape_cast %171 : vector<1x128xf32> to vector<1x1x128xf32>
    %cst_49 = arith.constant dense<0.000000e+00> : vector<1xf32>
    %173 = vector.multi_reduction <add>, %172, %cst_49 [1, 2] : vector<1x1x128xf32> to vector<1xf32>
    %174 = vector.shape_cast %173 : vector<1xf32> to vector<1x1x1xf32>
    %175 = vector.extract %174[0, 0, 0] : f32 from vector<1x1x1xf32>
    %176 = vector.broadcast %175 : f32 to vector<1x1xf32>
    %c0_50 = arith.constant 0 : index
    %c0_51 = arith.constant 0 : index
    %177 = vector.load %arg7[%c0_50, %c0_51] : memref<1x1xf32, #tpu.memory_space<vmem>>, vector<1x1xf32>
    tpu.vector_store %arg7[%c0_50, %c0_51], %176 {strides = array<i32>} : memref<1x1xf32, #tpu.memory_space<vmem>>, vector<1x1xf32>,
    %178 = vector.extract_strided_slice %0 {offsets = [4, 0], sizes = [1, 128], strides = [1, 1]} : vector<9x128xf32> to vector<1x128xf32>
    %cst_52 = arith.constant 0.000000e+00 : f32
    %179 = vector.broadcast %cst_52 : f32 to vector<1x128xf32>
    %180 = arith.subf %179, %178 : vector<1x128xf32>
    %181 = arith.mulf %180, %92 : vector<1x128xf32>
    %182 = arith.mulf %2, %181 : vector<1x128xf32>
    %183 = vector.shape_cast %182 : vector<1x128xf32> to vector<1x1x128xf32>
    %cst_53 = arith.constant dense<0.000000e+00> : vector<1xf32>
    %184 = vector.multi_reduction <add>, %183, %cst_53 [1, 2] : vector<1x1x128xf32> to vector<1xf32>
    %185 = vector.shape_cast %184 : vector<1xf32> to vector<1x1x1xf32>
    %186 = vector.extract %185[0, 0, 0] : f32 from vector<1x1x1xf32>
    %187 = vector.broadcast %186 : f32 to vector<1x1xf32>
    %c0_54 = arith.constant 0 : index
    %c0_55 = arith.constant 0 : index
    %188 = vector.load %arg8[%c0_54, %c0_55] : memref<1x1xf32, #tpu.memory_space<vmem>>, vector<1x1xf32>
    tpu.vector_store %arg8[%c0_54, %c0_55], %187 {strides = array<i32>} : memref<1x1xf32, #tpu.memory_space<vmem>>, vector<1x1xf32>,
    return
  }
}

module attributes {stable_mosaic.version = 11 : i64} {
  func.func @_conf_bce0_sum_kernel(%arg0: i32, %arg1: memref<3x128xf32, #tpu.memory_space<vmem>>, %arg2: memref<1x1xf32, #tpu.memory_space<vmem>>, %arg3: memref<3x128xf32, #tpu.memory_space<vmem>>) attributes {dimension_semantics = [#tpu.dimension_semantics<arbitrary>], iteration_bounds = array<i64: 1>, scalar_prefetch = 0 : i64, scratch_operands = 1 : i64, tpu.core_type = #tpu.core_type<tc>, window_params = [{transform_indices = @transform_0, window_bounds = array<i64: 3, 128>}, {pipeline_mode = #tpu.pipeline_mode<synchronous>, transform_indices = @transform_1, window_bounds = array<i64: 1, 1>}]} {
    %c0_i32 = arith.constant 0 : i32
    %0 = arith.cmpi eq, %arg0, %c0_i32 : i32
    %1 = arith.extui %0 : i1 to i32
    %c0_i32_0 = arith.constant 0 : i32
    %2 = arith.cmpi ne, %1, %c0_i32_0 : i32
    scf.if %2 {
      %cst_13 = arith.constant 0.000000e+00 : f32
      %31 = vector.broadcast %cst_13 : f32 to vector<3x128xf32>
      %c0_14 = arith.constant 0 : index
      %c0_15 = arith.constant 0 : index
      %32 = vector.load %arg3[%c0_14, %c0_15] : memref<3x128xf32, #tpu.memory_space<vmem>>, vector<3x128xf32>
      tpu.vector_store %arg3[%c0_14, %c0_15], %31 {strides = array<i32>} : memref<3x128xf32, #tpu.memory_space<vmem>>, vector<3x128xf32>,
    } else {
    }
    %c0 = arith.constant 0 : index
    %c0_1 = arith.constant 0 : index
    %3 = vector.load %arg1[%c0, %c0_1] : memref<3x128xf32, #tpu.memory_space<vmem>>, vector<3x128xf32>
    %4 = tpu.iota {dimensions = array<i32: 0>} : vector<3x128xi32>
    %c3_i32 = arith.constant 3 : i32
    %5 = arith.muli %arg0, %c3_i32 : i32
    %6 = vector.broadcast %5 : i32 to vector<3x128xi32>
    %7 = arith.addi %4, %6 : vector<3x128xi32>
    %c3_i32_2 = arith.constant 3 : i32
    %8 = vector.broadcast %c3_i32_2 : i32 to vector<3x128xi32>
    %9 = arith.cmpi slt, %7, %8 : vector<3x128xi32>
    %cst = arith.constant -1.000000e+04 : f32
    %10 = vector.broadcast %cst : f32 to vector<3x128xf32>
    %11 = arith.select %9, %3, %10 : vector<3x128xi1>, vector<3x128xf32>
    %c0_3 = arith.constant 0 : index
    %c0_4 = arith.constant 0 : index
    %12 = vector.load %arg3[%c0_3, %c0_4] : memref<3x128xf32, #tpu.memory_space<vmem>>, vector<3x128xf32>
    %cst_5 = arith.constant 0.000000e+00 : f32
    %13 = vector.broadcast %cst_5 : f32 to vector<3x128xf32>
    %14 = arith.maximumf %11, %13 : vector<3x128xf32>
    %cst_6 = arith.constant 0.000000e+00 : f32
    %15 = vector.broadcast %cst_6 : f32 to vector<3x128xf32>
    %16 = arith.mulf %11, %15 : vector<3x128xf32>
    %17 = arith.subf %14, %16 : vector<3x128xf32>
    %18 = math.absf %11 : vector<3x128xf32>
    %cst_7 = arith.constant 0.000000e+00 : f32
    %19 = vector.broadcast %cst_7 : f32 to vector<3x128xf32>
    %20 = arith.subf %19, %18 : vector<3x128xf32>
    %21 = math.exp %20 : vector<3x128xf32>
    %cst_8 = arith.constant 1.000000e+00 : f32
    %22 = vector.broadcast %cst_8 : f32 to vector<3x128xf32>
    %23 = arith.addf %22, %21 : vector<3x128xf32>
    %24 = math.log %23 : vector<3x128xf32>
    %25 = arith.addf %17, %24 : vector<3x128xf32>
    %26 = arith.addf %12, %25 : vector<3x128xf32>
    %c0_9 = arith.constant 0 : index
    %c0_10 = arith.constant 0 : index
    %27 = vector.load %arg3[%c0_9, %c0_10] : memref<3x128xf32, #tpu.memory_space<vmem>>, vector<3x128xf32>
    tpu.vector_store %arg3[%c0_9, %c0_10], %26 {strides = array<i32>} : memref<3x128xf32, #tpu.memory_space<vmem>>, vector<3x128xf32>,
    %c0_i32_11 = arith.constant 0 : i32
    %28 = arith.cmpi eq, %arg0, %c0_i32_11 : i32
    %29 = arith.extui %28 : i1 to i32
    %c0_i32_12 = arith.constant 0 : i32
    %30 = arith.cmpi ne, %29, %c0_i32_12 : i32
    scf.if %30 {
      %c0_13 = arith.constant 0 : index
      %c0_14 = arith.constant 0 : index
      %31 = vector.load %arg3[%c0_13, %c0_14] : memref<3x128xf32, #tpu.memory_space<vmem>>, vector<3x128xf32>
      %32 = vector.shape_cast %31 : vector<3x128xf32> to vector<1x3x128xf32>
      %cst_15 = arith.constant dense<0.000000e+00> : vector<1xf32>
      %33 = vector.multi_reduction <add>, %32, %cst_15 [1, 2] : vector<1x3x128xf32> to vector<1xf32>
      %34 = vector.shape_cast %33 : vector<1xf32> to vector<1x1x1xf32>
      %35 = vector.extract %34[0, 0, 0] : f32 from vector<1x1x1xf32>
      %36 = vector.broadcast %35 : f32 to vector<1x1xf32>
      %c0_16 = arith.constant 0 : index
      %c0_17 = arith.constant 0 : index
      %37 = vector.load %arg2[%c0_16, %c0_17] : memref<1x1xf32, #tpu.memory_space<vmem>>, vector<1x1xf32>
      tpu.vector_store %arg2[%c0_16, %c0_17], %36 {strides = array<i32>} : memref<1x1xf32, #tpu.memory_space<vmem>>, vector<1x1xf32>,
    } else {
    }
    return
  }
  func.func @transform_0(%arg0: i32) -> (i32, i32) {
    %c0_i32 = arith.constant 0 : i32
    %c0_i32_0 = arith.constant 0 : i32
    return %arg0, %c0_i32 : i32, i32
  }
  func.func @transform_1(%arg0: i32) -> (i32, i32) {
    %c0_i32 = arith.constant 0 : i32
    %c0_i32_0 = arith.constant 0 : i32
    %c0_i32_1 = arith.constant 0 : i32
    return %c0_i32, %c0_i32_0 : i32, i32
  }
}

</mosaic_0001>

<bundles_post_ra>
// kernel: squeeze.5
= control target key start
LH: loop header
LB: loop body
LE: loop exit
PB: predicated region body
PF: predicated region fallthrough
CT: control target
= control target key end

     0   :  { %vm6_vm0 = vcmask 1042434   ;;  %s11_s6 = smov 3  ;;  %s33_s11 = smov 3  ;;  %vm8_vm1 = vcmask 64512   ;;  %vm19_vm2 = vcmask 1048512   ;;  %vm30_vm3 = vcmask 982912   ;;  %s367_s0 = inlined_call_operand.vmem [shape: f32[2,3,8,8], index: 0, kind: input, shape index: {}]   ;;  %s368_s1 = inlined_call_operand.vmem [shape: f32[3,128], index: 1, kind: output, shape index: {}]  }
   0x1   :  { %v183_v0 = vld [vmem:[%s367_s0 + $0x2d] sm:$0x4]   ;;  %v187_v2 = vld [vmem:[%s367_s0 + $0x2b] sm:$0x4]   ;;  %s22_s16 = smov 3  ;;  %s227_s17 = smov 120  }
   0x2   :  { %v182_v1 = vld [vmem:[%s367_s0 + $0xf] ss:$16 sm:%s11_s6]   ;;  %v186_v4 = vld [vmem:[%s367_s0 + $0xd] ss:$16 sm:%s33_s11]   ;;  %s44_s18 = smov 3  ;;  %s228_s19 = smov 104  }
   0x3   :  { %v16_v3 = vsel %vm6_vm0, %v183_v0, %v182_v1  ;;  %v38_v5 = vsel %vm6_vm0, %v187_v2, %v186_v4  ;;  %v184_v6 = vld [vmem:[%s367_s0 + $0xe] ss:$16 sm:%s22_s16]   ;;  %v188_v8 = vld [vmem:[%s367_s0 + $0xc] ss:$16 sm:%s44_s18]   ;;  %s55_s28 = smov 3  ;;  %s77_s2 = smov 3 }
   0x4   :  { %17 = vrot.lane.b32.xlu0 %v16_v3, %s227_s17  ;;  %39 = vrot.lane.b32.xlu1 %v38_v5, %s228_s19  ;;  %v185_v7 = vld [vmem:[%s367_s0 + $0x2c] sm:$0x4]   ;;  %v189_v9 = vld [vmem:[%s367_s0 + $0x2a] sm:$0x4]   ;;  %s229_s5 = smov 112   ;;  %s88_s6 = smov 3 }
   0x5   :  { %v27_v10 = vsel %vm6_vm0, %v185_v7, %v184_v6  ;;  %v191_v11 = vld [vmem:[%s367_s0 + $0x29] sm:$0x4]   ;;  %v49_v12 = vsel %vm6_vm0, %v189_v9, %v188_v8  ;;  %s230_s7 = smov 88   ;;  %s66_s8 = smov 3  ;;  %v194_v15 = vld [vmem:[%s367_s0 + $0x9] ss:$16 sm:%s77_s2]  }
   0x6   :  { %v190_v13 = vld [vmem:[%s367_s0 + $0xb] ss:$16 sm:%s55_s28]   ;;  %s231_s9 = smov 96   ;;  %v195_v16 = vld [vmem:[%s367_s0 + $0x27] sm:$0x4]   ;;  %s110_s22 = smov 3 }
   0x7   :  { %v60_v14 = vsel %vm6_vm0, %v191_v11, %v190_v13  ;;  %v192_v17 = vld [vmem:[%s367_s0 + $0xa] ss:$16 sm:%s66_s8]   ;;  %v196_v19 = vld [vmem:[%s367_s0 + $0x8] ss:$16 sm:%s88_s6]   ;;  %v82_v21 = vsel %vm6_vm0, %v195_v16, %v194_v15  ;;  %s99_s23 = smov 3  ;;  %s232_s24 = smov 72  }
   0x8   :  { %61 = vrot.lane.b32.xlu2 %v60_v14, %s230_s7  ;;  %v193_v18 = vld [vmem:[%s367_s0 + $0x28] sm:$0x4]   ;;  %v197_v20 = vld [vmem:[%s367_s0 + $0x26] sm:$0x4]   ;;  %s121_s25 = smov 3  ;;  %s233_s26 = smov 80  }
   0x9   :  { %v71_v22 = vsel %vm6_vm0, %v193_v18, %v192_v17  ;;  %v93_v23 = vsel %vm6_vm0, %v197_v20, %v196_v19  ;;  %s234_s27 = smov 64   ;;  %v200_v24 = vld [vmem:[%s367_s0 + $0x6] ss:$16 sm:%s110_s22]   ;;  %v198_v26 = vld [vmem:[%s367_s0 + $0x7] ss:$16 sm:%s99_s23]   ;;  %s143_s11 = smov 3 }
   0xa   :  { %v201_v25 = vld [vmem:[%s367_s0 + $0x24] sm:$0x4]   ;;  %v199_v27 = vld [vmem:[%s367_s0 + $0x25] sm:$0x4]   ;;  %v202_v28 = vld [vmem:[%s367_s0 + $0x5] ss:$16 sm:%s121_s25]  }
   0xb   :  { %v203_v29 = vld [vmem:[%s367_s0 + $0x23] sm:$0x4]   ;;  %v115_v30 = vsel %vm6_vm0, %v201_v25, %v200_v24  ;;  %v104_v31 = vsel %vm6_vm0, %v199_v27, %v198_v26  ;;  %s132_s12 = smov 3  ;;  %s235_s13 = smov 48   ;;  %v206_v33 = vld [vmem:[%s367_s0 + $0x3] ss:$16 sm:%s143_s11]  }
   0xc   :  { %28 = vrot.lane.b32.xlu0 %v27_v10, %s229_s5  ;;  %50 = vrot.lane.b32.xlu1 %v49_v12, %s231_s9  ;;  %v126_v32 = vsel %vm6_vm0, %v203_v29, %v202_v28  ;;  %s154_s14 = smov 3  ;;  %s236_s15 = smov 56   ;;  %v207_v34 = vld [vmem:[%s367_s0 + $0x21] sm:$0x4]   ;;  %v205_v36 = vld [vmem:[%s367_s0 + $0x22] sm:$0x4]  }
   0xd   :  { %s237_s16 = smov 40   ;;  %v204_v35 = vld [vmem:[%s367_s0 + $0x4] ss:$16 sm:%s132_s12]   ;;  %v208_v37 = vld [vmem:[%s367_s0 + $0x2] ss:$16 sm:%s154_s14]   ;;  %v148_v39 = vsel %vm6_vm0, %v207_v34, %v206_v33  ;;  %s165_s29 = smov 3 }
   0xe   :  { %v209_v38 = vld [vmem:[%s367_s0 + $0x20] sm:$0x4]   ;;  %v137_v40 = vsel %vm6_vm0, %v205_v36, %v204_v35  ;;  %s238_s30 = smov 24   ;;  %s239_s2 = smov 32   ;;  %v210_v42 = vld [vmem:[%s367_s0 + $0x1] ss:$16 sm:%s165_s29]  }
   0xf   :  { %v159_v41 = vsel %vm6_vm0, %v209_v38, %v208_v37  ;;  %s240_s3 = smov 16   ;;  %v211_v43 = vld [vmem:[%s367_s0 + $0x1f] sm:$0x4]   ;;  %s241_s8 = smov 8   ;;  %v181_v46 = vld [vmem:[%s367_s0 + $0x1e] sm:$0x4]  }
  0x10   :  { %72 = vrot.lane.b32.xlu2 %v71_v22, %s233_s26  ;;  %v170_v44 = vsel %vm6_vm0, %v211_v43, %v210_v42  ;;  %s2_s9 = smov 3  ;;  %vm41_vm4 = vcmask 917312   ;;  %vm52_vm5 = vcmask 851712   ;;  %vm63_vm6 = vcmask 786112  }
  0x11   :  { %v3_v45 = vld [vmem:[%s367_s0] ss:$16 sm:%s2_s9]   ;;  %vm74_vm7 = vcmask 720512   ;;  %vm85_vm8 = vcmask 654912   ;;  %vm96_vm9 = vcmask 589312   ;;  %vm107_vm10 = vcmask 523712  }
  0x12   :  { %v7_v47 = vsel %vm6_vm0, %v181_v46, %v3_v45  ;;  %vm118_vm11 = vcmask 458112   ;;  %vm129_vm12 = vcmask 392512   ;;  %vm140_vm13 = vcmask 326912  }
  0x13   :  { %9 = vst.msk [vmem:[#allocation0] sm:$0x7] %vm8_vm1, %v7_v47   ;;  %vm151_vm14 = vcmask 261312   ;;  %vm162_vm15 = vcmask 195712   ;;  %vm173_vm0 = vcmask 130112  }
  0x14   :  { %83 = vrot.lane.b32.xlu0 %v82_v21, %s232_s24  ;;  %94 = vrot.lane.b32.xlu1 %v93_v23, %s234_s27 }
  0x18   :  { %105 = vrot.lane.b32.xlu2 %v104_v31, %s236_s15 }
  0x1c   :  { %116 = vrot.lane.b32.xlu0 %v115_v30, %s235_s13  ;;  %127 = vrot.lane.b32.xlu1 %v126_v32, %s237_s16 }
  0x20   :  { %138 = vrot.lane.b32.xlu2 %v137_v40, %s239_s2 }
  0x24   :  { %149 = vrot.lane.b32.xlu0 %v148_v39, %s238_s30  ;;  %160 = vrot.lane.b32.xlu1 %v159_v41, %s240_s3 }
  0x28   :  { %171 = vrot.lane.b32.xlu2 %v170_v44, %s241_s8 }
  0x62   :  { %v62_v48 = vpop.permute.xlu2 %61  }
  0x6a   :  { %v73_v49 = vpop.permute.xlu2 %72  }
  0x72   :  { %v106_v51 = vpop.permute.xlu2 %105  }
  0x76   :  { %v18_v50 = vpop.permute.xlu0 %17   ;;  %v40_v52 = vpop.permute.xlu1 %39  }
  0x77   :  { %20 = vst.msk [vmem:[#allocation0] sm:$0x7] %vm19_vm2, %v18_v50  }
  0x7a   :  { %v139_v54 = vpop.permute.xlu2 %138  }
  0x7e   :  { %v29_v53 = vpop.permute.xlu0 %28   ;;  %v51_v55 = vpop.permute.xlu1 %50  }
  0x7f   :  { %31 = vst.msk [vmem:[#allocation0] sm:$0x7] %vm30_vm3, %v29_v53  }
  0x80   :  { %42 = vst.msk [vmem:[#allocation0] sm:$0x7] %vm41_vm4, %v40_v52  }
  0x81   :  { %53 = vst.msk [vmem:[#allocation0] sm:$0x7] %vm52_vm5, %v51_v55  }
  0x82   :  { %64 = vst.msk [vmem:[#allocation0] sm:$0x7] %vm63_vm6, %v62_v48   ;;  %v172_v57 = vpop.permute.xlu2 %171  }
  0x83   :  { %75 = vst.msk [vmem:[#allocation0] sm:$0x7] %vm74_vm7, %v73_v49  }
  0x86   :  { %v84_v56 = vpop.permute.xlu0 %83   ;;  %v95_v58 = vpop.permute.xlu1 %94  }
  0x87   :  { %86 = vst.msk [vmem:[#allocation0] sm:$0x7] %vm85_vm8, %v84_v56  }
  0x88   :  { %97 = vst.msk [vmem:[#allocation0] sm:$0x7] %vm96_vm9, %v95_v58  }
  0x89   :  { %108 = vst.msk [vmem:[#allocation0] sm:$0x7] %vm107_vm10, %v106_v51  }
  0x8e   :  { %v117_v59 = vpop.permute.xlu0 %116   ;;  %v128_v60 = vpop.permute.xlu1 %127  }
  0x8f   :  { %119 = vst.msk [vmem:[#allocation0] sm:$0x7] %vm118_vm11, %v117_v59  }
  0x90   :  { %130 = vst.msk [vmem:[#allocation0] sm:$0x7] %vm129_vm12, %v128_v60  }
  0x91   :  { %141 = vst.msk [vmem:[#allocation0] sm:$0x7] %vm140_vm13, %v139_v54  }
  0x96   :  { %v150_v61 = vpop.permute.xlu0 %149   ;;  %v161_v62 = vpop.permute.xlu1 %160  }
  0x97   :  { %152 = vst.msk [vmem:[#allocation0] sm:$0x7] %vm151_vm14, %v150_v61  }
  0x98   :  { %163 = vst.msk [vmem:[#allocation0] sm:$0x7] %vm162_vm15, %v161_v62  }
  0x99   :  { %174 = vst.msk [vmem:[#allocation0] sm:$0x7] %vm173_vm0, %v172_v57  }
  0xa0   :  { %v177_v63 = vld [vmem:[#allocation0] sm:$0xf] }
  0xa1   :  { %180 = vst [vmem:[%s368_s1] sm:$0xf] %v177_v63 }

// kernel: _level_losses_matched.3
= control target key start
LH: loop header
LB: loop body
LE: loop exit
PB: predicated region body
PF: predicated region fallthrough
CT: control target
= control target key end

     0   :  { %v15_v0 = vlaneseq  ;;  %s122_s0 = inlined_call_operand.vmem [shape: f32[3,128], index: 0, kind: input, shape index: {}]   ;;  %s123_s1 = inlined_call_operand.hbm [shape: f32[1,1], index: 1, kind: output, shape index: {}]  }
   0x1   :  { %6 = vsyncpa [#allocation4], 0  ;;  %v104_v1 = vmov 0.0   ;;  %v14_v2 = vld [vmem:[%s122_s0] sm:$0x7]  ;;  %vm40_vm1 = vcmask 1042432  }
   0x2   :  { %13 = vst [vmem:[#allocation2] sm:$0x7] %v104_v1  ;;  %v16_v3 = vshrl.u32 %v15_v0, 7  ;;  %s105_s0 = smov [#allocation3]   ;;  %s61_s11 = sshll.u32 %s123_s1, 4  ;;  %vm52_vm2 = vcmask 0   ;;  %s62_s11 = int_to_ptr.hbm [resolvable:$true] %s61_s11 }
   0x3   :  { %s59_s8 = sshll.u32 %s105_s0, 4  ;;  %s60_s8 = int_to_ptr.vmem [resolvable:$true] %s59_s8 }
   0x4   :  { %vm20_vm0 = vcmp.lt.s32.totalorder %v16_v3, 3 }
   0x5   :  { %v21_v4 = vsel %vm20_vm0, %v14_v2, -10000.0 }
   0x6   :  { %v26_v5 = vand.u32 2147483647, %v21_v4  ;;  %v23_v10 = vmax.f32 %v21_v4, 0.0  ;;  %v24_v11 = vmul.f32 0.0, %v21_v4 }
   0x8   :  { %v27_v6 = vsub.f32 0.0, %v26_v5  ;;  %v25_v12 = vsub.f32 %v23_v10, %v24_v11 }
   0x9   :  { %v22_v15 = vld [vmem:[#allocation2] sm:$0x7] }
   0xa   :  { %v28_v7 = vmul.f32 1.442695, %v27_v6 }
   0xc   :  { %74 = vpow2.f32 %v28_v7 }
  0x12   :  { %v75_v8 = vpop.eup %74 }
  0x13   :  { %v30_v9 = vadd.f32 1.0, %v75_v8 }
  0x15   :  { %76 = vlog2.f32 %v30_v9 }
  0x1b   :  { %v77_v13 = vpop.eup %76 }
  0x1c   :  { %v32_v14 = vmul.f32 0.6931472, %v77_v13 }
  0x1e   :  { %v33_v16 = vadd.f32 %v32_v14, %v25_v12 }
  0x20   :  { %v34_v17 = vadd.f32 %v33_v16, %v22_v15 }
  0x22   :  { %35 = vst [vmem:[#allocation2] sm:$0x7] %v34_v17 }
  0x29   :  { %v39_v18 = vld [vmem:[#allocation2] sm:$0x7] }
  0x2a   :  { %v41_v19 = vsel %vm40_vm1, %v39_v18, 0.0 }
  0x2b   :  { %42 = vadd.xlane.f32.xlu0 %v41_v19 }
  0x9e   :  { %v43_v20 = vpop.xlane.xlu0 %42 }
  0x9f   :  { %v44_v21 = vrot.slane %v43_v20, 4 }
  0xa1   :  { %v45_v22 = vadd.f32 %v44_v21, %v43_v20 }
  0xa3   :  { %v46_v23 = vrot.slane %v45_v22, 2 }
  0xa5   :  { %v47_v24 = vadd.f32 %v46_v23, %v45_v22 }
  0xa7   :  { %v48_v25 = vrot.slane %v47_v24, 1 }
  0xa9   :  { %v49_v26 = vadd.f32 %v48_v25, %v47_v24 }
  0xab   :  { %70 = vpush %v49_v26 }
  0xdc   :  { %s71_s12 = spop %70 }
  0xdd   :  { %v51_v27 = vstv %s71_s12 }
  0xde   :  { %53 = vst.msk [vmem:[#allocation3] sm:$0x1] %vm52_vm2, %v51_v27 }
  0xdf   :  { %64 = dma.vmem_to_hbm [thread:$0]  %s60_s8, 16, %s62_s11, [#allocation4]  }
  0xe0   :  { %102 = dma.done.wait [#allocation4], 16  }
  0xe1   :  { %103 = vsyncadd [#allocation4], 4294967280 }
  0xe2   :  { %69 = vsyncpa [#allocation4], 1 }

// kernel: _level_losses_matched.2
= control target key start
LH: loop header
LB: loop body
LE: loop exit
PB: predicated region body
PF: predicated region fallthrough
CT: control target
= control target key end

     0   :  { %14 = vsyncpa [#allocation3], 0  ;;  %s715_s0 = inlined_call_operand.vmem [shape: f32[9,128], index: 0, kind: input, shape index: {}]   ;;  %s716_s1 = inlined_call_operand.vmem [shape: f32[2,128], index: 1, kind: input, shape index: {}]   ;;  %s717_s2 = inlined_call_operand.vmem [shape: f32[4,128], index: 2, kind: input, shape index: {}]   ;;  %s718_s3 = inlined_call_operand.vmem [shape: f32[4,128], index: 3, kind: input, shape index: {}]   ;;  %s719_s4 = inlined_call_operand.vmem [shape: f32[1,128], index: 4, kind: input, shape index: {}]   ;;  %s720_s5 = inlined_call_operand.vmem [shape: f32[1,128], index: 5, kind: input, shape index: {}]   ;;  %s721_s6 = inlined_call_operand.hbm [shape: f32[1,1], index: 6, kind: output, shape index: {0}]   ;;  %s722_s7 = inlined_call_operand.hbm [shape: f32[1,1], index: 7, kind: output, shape index: {1}]   ;;  %s723_s8 = inlined_call_operand.hbm [shape: f32[1,1], index: 8, kind: output, shape index: {2}]  }
   0x1   :  { %v560_v0 = vld [vmem:[%s715_s0] sm:$0xff]  ;;  %v29_v1 = vld [vmem:[%s715_s0 + $0x8] sm:$0x1] }
   0x2   :  { %v42_v2 = vand.u32 2147483647, %v560_v0  ;;  %v43_v3 = vand.u32 2147483647, %v29_v1  ;;  %v394_v5 = vmul.f32 -1.442695, %v560_v0 }
   0x3   :  { %v104_v7 = vmul.f32 1.442695, %v560_v0  ;;  %v571_v8 = vld [vmem:[%s717_s2] sm:$0xf] }
   0x4   :  { %v44_v4 = vsub.f32 0.0, %v42_v2  ;;  %v45_v6 = vsub.f32 0.0, %v43_v3  ;;  %405 = vpow2.f32 %v394_v5 }
   0x6   :  { %v46_v9 = vmul.f32 1.442695, %v44_v4 }
   0x7   :  { %15 = vsyncpa [#allocation5], 0  ;;  %v48_v10 = vmul.f32 1.442695, %v45_v6  ;;  %v84_v11 = vld [vmem:[%s716_s1] sm:$0x3]  ;;  %407 = vpow2.f32 %v104_v7 }
   0x8   :  { %409 = vpow2.f32 %v46_v9  ;;  %v577_v12 = vrot.slane %v571_v8, 1  ;;  %v32_v13 = vld [vmem:[%s718_s3] sm:$0xf]  ;;  %v107_v14 = vrot.slane %v84_v11, 6  ;;  %v33_v24 = vmax.f32 %v560_v0, 0.0  ;;  %s354_s18 = sshll.u32 %s721_s6, 4  ;;  %s355_s18 = int_to_ptr.hbm [resolvable:$true] %s354_s18 }
   0x9   :  { %411 = vpow2.f32 %v48_v10  ;;  %v36_v17 = vrot.slane %v32_v13, 3  ;;  %v34_v25 = vmax.f32 %v29_v1, 0.0  ;;  %v117_v31 = vmul.f32 0.5, %v571_v8  ;;  %v404_v50 = vld [vmem:[%s719_s4] ss:$0 sm:$0xff]  ;;  %s509_s19 = smov [#allocation2]  }
   0xa   :  { %413 = vrcp.f32 %v577_v12  ;;  %v406_v15 = vpop.eup %405  ;;  %vm183_vm0 = vweird.f32 %v577_v12  ;;  %v189_v32 = vand.u32 2147483648, %v577_v12  ;;  %v187_v34 = vand.u32 2147483647, %v577_v12  ;;  %s510_s6 = smov [#allocation4]   ;;  %s365_s24 = sshll.u32 %s722_s7, 4  ;;  %s366_s24 = int_to_ptr.hbm [resolvable:$true] %s365_s24 }
   0xb   :  { %v88_v18 = vadd.f32 1.0, %v406_v15  ;;  %v38_v28 = vmul.f32 %v36_v17, %v560_v0  ;;  %v39_v29 = vmul.f32 %v36_v17, %v29_v1  ;;  %vm65_vm2 = vcmask 1042432   ;;  %s363_s21 = sshll.u32 %s510_s6, 4  ;;  %s511_s25 = smov [#allocation6]   ;;  %s364_s21 = int_to_ptr.vmem [resolvable:$true] %s363_s21 }
   0xc   :  { %v190_v43 = vor.u32 1.1754944e-38, %v189_v32  ;;  %v119_v46 = vrot.slane %v117_v31, 2  ;;  %vm188_vm4 = vcmp.eq.f32.partialorder %v187_v34, 8.507059e+37  ;;  %vm70_vm11 = vcmask 1043456   ;;  %s374_s26 = sshll.u32 %s511_s25, 4  ;;  %s376_s29 = sshll.u32 %s723_s8, 4  ;;  %s375_s26 = int_to_ptr.vmem [resolvable:$true] %s374_s26  ;;  %s377_s29 = int_to_ptr.hbm [resolvable:$true] %s376_s29 }
   0xd   :  { %v408_v16 = vpop.eup %407  ;;  %415 = vrcp.f32 %v88_v18  ;;  %v98_v36 = vand.u32 2147483647, %v88_v18  ;;  %v100_v37 = vand.u32 2147483648, %v88_v18  ;;  %v40_v39 = vsub.f32 %v33_v24, %v38_v28 }
   0xe   :  { %v410_v19 = vpop.eup %409  ;;  %v583_v20 = vmul.f32 %v408_v16, %v107_v14  ;;  %v41_v40 = vsub.f32 %v34_v25, %v39_v29  ;;  %vm94_vm5 = vweird.f32 %v88_v18  ;;  %v625_v11 = vsub.f32 %v571_v8, %v119_v46 }
   0xf   :  { %v412_v21 = vpop.eup %411  ;;  %v50_v22 = vadd.f32 1.0, %v410_v19  ;;  %vm604_vm7 = vcmp.eq.f32.partialorder %v98_v36, 8.507059e+37  ;;  %v101_v55 = vor.u32 1.1754944e-38, %v100_v37  ;;  %v628_v13 = vadd.f32 %v119_v46, %v571_v8 }
  0x10   :  { %v414_v23 = vpop.eup %413  ;;  %v51_v26 = vadd.f32 1.0, %v412_v21  ;;  %v587_v27 = vrot.slane %v583_v20, 1  ;;  %v111_v45 = vmul.f32 0.5, %v583_v20 }
  0x11   :  { %417 = vlog2.f32 %v50_v22  ;;  %v179_v30 = vmul.f32 %v414_v23, %v577_v12  ;;  %vm184_vm1 = vweird.f32 %v414_v23 }
  0x12   :  { %419 = vlog2.f32 %v51_v26  ;;  %vm596_vm3 = vmor %vm183_vm0, %vm184_vm1  ;;  %v113_v63 = vrot.slane %v111_v45, 2  ;;  %vm227_vm9 = vweird.f32 %v587_v27  ;;  %v233_v5 = vand.u32 2147483648, %v587_v27 }
  0x13   :  { %421 = vrcp.f32 %v587_v27  ;;  %v180_v33 = vsub.f32 1.0, %v179_v30  ;;  %v416_v35 = vpop.eup %415  ;;  %v231_v7 = vand.u32 2147483647, %v587_v27  ;;  %v138_v30 = vmul.f32 %v577_v12, %v571_v8 }
  0x14   :  { %v90_v41 = vmul.f32 %v416_v35, %v88_v18  ;;  %vm95_vm6 = vweird.f32 %v416_v35  ;;  %v234_v19 = vor.u32 1.1754944e-38, %v233_v5 }
  0x15   :  { %v181_v38 = vmul.f32 %v414_v23, %v180_v33  ;;  %vm611_vm8 = vmor %vm94_vm5, %vm95_vm6  ;;  %vm232_vm13 = vcmp.eq.f32.partialorder %v231_v7, 8.507059e+37  ;;  %v134_v33 = vmul.f32 %v587_v27, %v583_v20 }
  0x16   :  { %v91_v51 = vsub.f32 1.0, %v90_v41 }
  0x17   :  { %v418_v44 = vpop.eup %417  ;;  %v182_v47 = vadd.f32 %v414_v23, %v181_v38 }
  0x18   :  { %v420_v48 = vpop.eup %419  ;;  %v53_v49 = vmul.f32 0.6931472, %v418_v44  ;;  %v92_v58 = vmul.f32 %v416_v35, %v91_v51 }
  0x19   :  { %v422_v52 = vpop.eup %421  ;;  %v55_v53 = vmul.f32 0.6931472, %v420_v48  ;;  %v186_v56 = vsel %vm596_vm3, %v414_v23, %v182_v47 }
  0x1a   :  { %v56_v57 = vadd.f32 %v53_v49, %v40_v39  ;;  %v191_v59 = vsel %vm188_vm4, %v190_v43, %v186_v56  ;;  %v223_v60 = vmul.f32 %v422_v52, %v587_v27  ;;  %v93_v3 = vadd.f32 %v416_v35, %v92_v58 }
  0x1b   :  { %v57_v61 = vadd.f32 %v55_v53, %v41_v40  ;;  %v616_v1 = vmul.f32 %v191_v59, %v571_v8  ;;  %vm228_vm10 = vweird.f32 %v422_v52  ;;  %v139_v27 = vadd.f32 %v138_v30, %v134_v33 }
  0x1c   :  { %v61_v2 = vmul.f32 %v404_v50, %v56_v57  ;;  %v224_v4 = vsub.f32 1.0, %v223_v60  ;;  %v97_v10 = vsel %vm611_vm8, %v416_v35, %v93_v3  ;;  %vm229_vm12 = vmor %vm227_vm9, %vm228_vm10  ;;  %v325_v33 = vsub.f32 0.0, %v560_v0  ;;  %v31_v0 = vld [vmem:[%s720_s5] sm:$0x1] }
  0x1d   :  { %v62_v6 = vmul.f32 %v404_v50, %v57_v61  ;;  %423 = vrcp.f32 %v616_v1  ;;  %v632_v15 = vsel %vm604_vm7, %v101_v55, %v97_v10  ;;  %vm199_vm14 = vweird.f32 %v616_v1 }
  0x1e   :  { %v66_v9 = vrot.slane %v61_v2, 5  ;;  %v225_v16 = vmul.f32 %v422_v52, %v224_v4  ;;  %v635_v17 = vsub.f32 %v632_v15, %v113_v63  ;;  %v638_v18 = vadd.f32 %v113_v63, %v632_v15 }
  0x1f   :  { %v67_v14 = vrot.slane %v62_v6, 5  ;;  %v205_v34 = vand.u32 2147483648, %v616_v1  ;;  %v203_v38 = vand.u32 2147483647, %v616_v1  ;;  %v676_v63 = vsub.f32 %v571_v8, %v632_v15 }
  0x20   :  { %v226_v22 = vadd.f32 %v422_v52, %v225_v16  ;;  %v123_v24 = vmin.f32 %v638_v18, %v628_v13  ;;  %v124_v25 = vmax.f32 %v635_v17, %v625_v11  ;;  %v163_v61 = vmax.f32 %v638_v18, %v628_v13 }
  0x21   :  { %v68_v21 = vsel %vm65_vm2, %v66_v9, %v67_v14  ;;  %v206_v40 = vor.u32 1.1754944e-38, %v205_v34  ;;  %vm204_vm1 = vcmp.eq.f32.partialorder %v203_v38, 8.507059e+37  ;;  %vm193_vm2 = vcmp.gt.f32.partialorder %v616_v1, 1.0 }
  0x22   :  { %v71_v23 = vsel %vm70_vm11, %v68_v21, 0.0  ;;  %v230_v28 = vsel %vm229_vm12, %v422_v52, %v226_v22  ;;  %v125_v29 = vsub.f32 %v123_v24, %v124_v25  ;;  %v164_v62 = vmin.f32 %v635_v17, %v625_v11 }
  0x23   :  { %v424_v26 = vpop.eup %423  ;;  %72 = vadd.xlane.f32.xlu0 %v71_v23  ;;  %v235_v32 = vsel %vm232_vm13, %v234_v19, %v230_v28  ;;  %vm312_vm12 = vcmask 1040384  }
  0x24   :  { %v195_v31 = vmul.f32 %v424_v26, %v616_v1  ;;  %v655_v35 = vmul.f32 %v235_v32, %v583_v20  ;;  %v126_v36 = vmax.f32 %v125_v29, 0.0  ;;  %vm200_vm15 = vweird.f32 %v424_v26 }
  0x25   :  { %vm201_vm0 = vmor %vm199_vm14, %vm200_vm15  ;;  %v165_v9 = vsub.f32 %v163_v61, %v164_v62 }
  0x26   :  { %v196_v37 = vsub.f32 1.0, %v195_v31  ;;  %425 = vrcp.f32 %v655_v35  ;;  %v128_v12 = vrot.slane %v126_v36, 1  ;;  %v249_v52 = vand.u32 2147483648, %v655_v35 }
  0x27   :  { %vm243_vm3 = vweird.f32 %v655_v35  ;;  %v247_v54 = vand.u32 2147483647, %v655_v35  ;;  %vm237_vm7 = vcmp.gt.f32.partialorder %v655_v35, 1.0  ;;  %v166_v15 = vmul.f32 %v165_v9, %v165_v9 }
  0x28   :  { %v197_v39 = vmul.f32 %v424_v26, %v196_v37  ;;  %v659_v41 = vmul.f32 %v128_v12, %v126_v36  ;;  %v250_v58 = vor.u32 1.1754944e-38, %v249_v52 }
  0x29   :  { %vm248_vm6 = vcmp.eq.f32.partialorder %v247_v54, 8.507059e+37  ;;  %v168_v25 = vrot.slane %v166_v15, 1 }
  0x2a   :  { %v198_v42 = vadd.f32 %v424_v26, %v197_v39  ;;  %v141_v20 = vrot.slane %v659_v41, 6 }
  0x2b   :  { %v170_v34 = vadd.f32 %v168_v25, %v166_v15 }
  0x2c   :  { %v202_v43 = vsel %vm201_vm0, %v424_v26, %v198_v42  ;;  %v426_v44 = vpop.eup %425  ;;  %v143_v46 = vsub.f32 %v139_v27, %v141_v20 }
  0x2d   :  { %v207_v45 = vsel %vm204_vm1, %v206_v40, %v202_v43  ;;  %v239_v48 = vmul.f32 %v426_v44, %v655_v35  ;;  %vm244_vm4 = vweird.f32 %v426_v44  ;;  %v171_v40 = vadd.f32 1e-07, %v170_v34 }
  0x2e   :  { %v209_v47 = vsel %vm193_vm2, %v207_v45, %v616_v1  ;;  %v144_v50 = vadd.f32 1e-07, %v143_v46  ;;  %vm245_vm5 = vmor %vm243_vm3, %vm244_vm4 }
  0x2f   :  { %v210_v49 = vmul.f32 %v209_v47, %v209_v47  ;;  %v240_v51 = vsub.f32 1.0, %v239_v48  ;;  %vm294_vm13 = vweird.f32 %v171_v40  ;;  %v298_v61 = vand.u32 2147483647, %v171_v40 }
  0x30   :  { %v146_v55 = vrot.slane %v144_v50, 2  ;;  %v300_v62 = vand.u32 2147483648, %v171_v40 }
  0x31   :  { %v211_v53 = vmul.f32 0.0208351, %v210_v49  ;;  %v241_v56 = vmul.f32 %v426_v44, %v240_v51  ;;  %vm299_vm4 = vcmp.eq.f32.partialorder %v298_v61, 8.507059e+37 }
  0x32   :  { %427 = vrcp.f32 %v146_v55  ;;  %v159_v11 = vand.u32 2147483648, %v146_v55  ;;  %vm153_vm8 = vweird.f32 %v146_v55  ;;  %v157_v8 = vand.u32 2147483647, %v146_v55 }
  0x33   :  { %v212_v57 = vadd.f32 -0.085133, %v211_v53  ;;  %v242_v60 = vadd.f32 %v426_v44, %v241_v56  ;;  %429 = vrcp.f32 %v171_v40 }
  0x34   :  { %v160_v22 = vor.u32 1.1754944e-38, %v159_v11  ;;  %vm158_vm11 = vcmp.eq.f32.partialorder %v157_v8, 8.507059e+37 }
  0x35   :  { %v213_v59 = vmul.f32 %v212_v57, %v210_v49  ;;  %v246_v3 = vsel %vm245_vm5, %v426_v44, %v242_v60  ;;  %v173_v57 = vmul.f32 %v676_v63, %v676_v63  ;;  %vm82_vm5 = vcmask 0  }
  0x36   :  { %v251_v4 = vsel %vm248_vm6, %v250_v58, %v246_v3 }
  0x37   :  { %v214_v2 = vadd.f32 0.180141, %v213_v59  ;;  %v253_v6 = vsel %vm237_vm7, %v251_v4, %v655_v35  ;;  %v175_v4 = vrot.slane %v173_v57, 1 }
  0x38   :  { %v428_v7 = vpop.eup %427  ;;  %v254_v10 = vmul.f32 %v253_v6, %v253_v6 }
  0x39   :  { %v215_v5 = vmul.f32 %v214_v2, %v210_v49  ;;  %v149_v13 = vmul.f32 %v428_v7, %v146_v55  ;;  %vm154_vm9 = vweird.f32 %v428_v7  ;;  %v430_v50 = vpop.eup %429 }
  0x3a   :  { %v255_v16 = vmul.f32 0.0208351, %v254_v10  ;;  %vm155_vm10 = vmor %vm153_vm8, %vm154_vm9  ;;  %v290_v53 = vmul.f32 %v430_v50, %v171_v40  ;;  %vm295_vm14 = vweird.f32 %v430_v50 }
  0x3b   :  { %v216_v14 = vadd.f32 -0.3302995, %v215_v5  ;;  %v150_v17 = vsub.f32 1.0, %v149_v13  ;;  %vm296_vm1 = vmor %vm294_vm13, %vm295_vm14 }
  0x3c   :  { %v256_v19 = vadd.f32 -0.085133, %v255_v16  ;;  %v291_v55 = vsub.f32 1.0, %v290_v53 }
  0x3d   :  { %v217_v18 = vmul.f32 %v216_v14, %v210_v49  ;;  %v151_v21 = vmul.f32 %v428_v7, %v150_v17 }
  0x3e   :  { %v257_v23 = vmul.f32 %v256_v19, %v254_v10  ;;  %v292_v56 = vmul.f32 %v430_v50, %v291_v55 }
  0x3f   :  { %v152_v24 = vadd.f32 %v428_v7, %v151_v21  ;;  %v218_v26 = vadd.f32 0.999866, %v217_v18  ;;  %v30_v21 = vld [vmem:[%s719_s4] sm:$0x1]  ;;  %s352_s4 = sshll.u32 %s509_s19, 4  ;;  %s353_s4 = int_to_ptr.vmem [resolvable:$true] %s352_s4 }
  0x40   :  { %v258_v28 = vadd.f32 0.180141, %v257_v23  ;;  %v293_v60 = vadd.f32 %v430_v50, %v292_v56 }
  0x41   :  { %v156_v29 = vsel %vm155_vm10, %v428_v7, %v152_v24  ;;  %v219_v36 = vmul.f32 %v218_v26, %v209_v47  ;;  %v301_v7 = vor.u32 1.1754944e-38, %v300_v62 }
  0x42   :  { %v161_v30 = vsel %vm158_vm11, %v160_v22, %v156_v29  ;;  %v259_v31 = vmul.f32 %v258_v28, %v254_v10  ;;  %v297_v63 = vsel %vm296_vm1, %v430_v50, %v293_v60 }
  0x43   :  { %v683_v32 = vmul.f32 %v161_v30, %v659_v41  ;;  %v220_v27 = vsub.f32 1.5707964, %v219_v36  ;;  %v302_v11 = vsel %vm299_vm4, %v301_v7, %v297_v63 }
  0x44   :  { %v260_v37 = vadd.f32 -0.3302995, %v259_v31 }
  0x45   :  { %v326_v38 = vrot.slane %v683_v32, 4  ;;  %v221_v43 = vsel %vm193_vm2, %v220_v27, %v219_v36  ;;  %v270_v49 = vrot.slane %v683_v32, 6 }
  0x46   :  { %v261_v12 = vmul.f32 %v260_v37, %v254_v10  ;;  %v177_v10 = vadd.f32 %v175_v4, %v173_v57 }
  0x47   :  { %v328_v39 = vmul.f32 %v326_v38, %v325_v33 }
  0x48   :  { %v262_v42 = vadd.f32 0.999866, %v261_v12  ;;  %v303_v17 = vmul.f32 %v302_v11, %v177_v10 }
  0x49   :  { %330 = vst [vmem:[#allocation1] sm:$0xff] %v328_v39 }
  0x4a   :  { %v263_v20 = vmul.f32 %v262_v42, %v253_v6 }
  0x4c   :  { %v264_v44 = vsub.f32 1.5707964, %v263_v20 }
  0x4e   :  { %v265_v41 = vsel %vm237_vm7, %v264_v44, %v263_v20 }
  0x4f   :  { %v266_v45 = vsub.f32 %v221_v43, %v265_v41 }
  0x50   :  { %v332_v46 = vld [vmem:[#allocation1 + $0x4] ss:$9 sm:$0xff] }
  0x51   :  { %v334_v47 = vmul.f32 %v332_v46, %v31_v0  ;;  %v267_v48 = vmul.f32 0.40528473, %v266_v45 }
  0x53   :  { %v335_v1 = vsel %vm312_vm12, %v334_v47, 0.0  ;;  %v268_v51 = vmul.f32 %v267_v48, %v266_v45 }
  0x54   :  { %336 = vadd.xlane.f32.xlu1 %v335_v1 }
  0x55   :  { %v272_v52 = vsub.f32 %v268_v51, %v270_v49 }
  0x57   :  { %v273_v54 = vadd.f32 1.0000001, %v272_v52 }
  0x59   :  { %431 = vrcp.f32 %v273_v54  ;;  %v285_v59 = vand.u32 2147483648, %v273_v54  ;;  %vm279_vm15 = vweird.f32 %v273_v54  ;;  %v283_v3 = vand.u32 2147483647, %v273_v54 }
  0x5b   :  { %v286_v6 = vor.u32 1.1754944e-38, %v285_v59  ;;  %vm284_vm3 = vcmp.eq.f32.partialorder %v283_v3, 8.507059e+37 }
  0x5f   :  { %v432_v35 = vpop.eup %431 }
  0x60   :  { %v275_v58 = vmul.f32 %v432_v35, %v273_v54  ;;  %vm280_vm0 = vweird.f32 %v432_v35 }
  0x61   :  { %vm281_vm2 = vmor %vm279_vm15, %vm280_vm0 }
  0x62   :  { %v276_v2 = vsub.f32 1.0, %v275_v58 }
  0x64   :  { %v277_v5 = vmul.f32 %v432_v35, %v276_v2 }
  0x66   :  { %v278_v9 = vadd.f32 %v432_v35, %v277_v5 }
  0x68   :  { %v282_v13 = vsel %vm281_vm2, %v432_v35, %v278_v9 }
  0x69   :  { %v287_v14 = vsel %vm284_vm3, %v286_v6, %v282_v13 }
  0x6a   :  { %v288_v16 = vmul.f32 %v287_v14, %v268_v51 }
  0x6c   :  { %v304_v8 = vmul.f32 %v288_v16, %v268_v51 }
  0x6e   :  { %v306_v15 = vrot.slane %v304_v8, 2 }
  0x70   :  { %v308_v18 = vadd.f32 %v306_v15, %v303_v17 }
  0x72   :  { %v309_v19 = vsub.f32 %v683_v32, %v308_v18 }
  0x74   :  { %v310_v22 = vsub.f32 1.0, %v309_v19 }
  0x76   :  { %v311_v23 = vmul.f32 %v310_v22, %v30_v21 }
  0x78   :  { %v313_v24 = vsel %vm312_vm12, %v311_v23, 0.0 }
  0x79   :  { %314 = vadd.xlane.f32.xlu0 %v313_v24 }
  0x96   :  { %v73_v25 = vpop.xlane.xlu0 %72 }
  0x97   :  { %v74_v26 = vrot.slane %v73_v25, 4 }
  0x99   :  { %v75_v28 = vadd.f32 %v74_v26, %v73_v25 }
  0x9b   :  { %v76_v29 = vrot.slane %v75_v28, 2 }
  0x9d   :  { %v77_v30 = vadd.f32 %v76_v29, %v75_v28 }
  0x9f   :  { %v78_v31 = vrot.slane %v77_v30, 1 }
  0xa1   :  { %v79_v33 = vadd.f32 %v78_v31, %v77_v30 }
  0xa3   :  { %395 = vpush %v79_v33 }
  0xc7   :  { %v337_v34 = vpop.xlane.xlu1 %336 }
  0xc8   :  { %v338_v32 = vrot.slane %v337_v34, 4 }
  0xca   :  { %v339_v37 = vadd.f32 %v338_v32, %v337_v34 }
  0xcc   :  { %v340_v38 = vrot.slane %v339_v37, 2 }
  0xce   :  { %v341_v27 = vadd.f32 %v340_v38, %v339_v37 }
  0xd0   :  { %v342_v43 = vrot.slane %v341_v27, 1 }
  0xd2   :  { %v343_v41 = vadd.f32 %v342_v43, %v341_v27 }
  0xd4   :  { %s396_s20 = spop %395 }
  0xd5   :  { %v81_v36 = vstv %s396_s20 }
  0xd6   :  { %83 = vst.msk [vmem:[#allocation2] sm:$0x1] %vm82_vm5, %v81_v36 }
  0xd7   :  { %357 = dma.vmem_to_hbm [thread:$0]  %s353_s4, 16, %s355_s18, [#allocation3]  }
  0xec   :  { %v315_v12 = vpop.xlane.xlu0 %314 }
  0xed   :  { %v316_v39 = vrot.slane %v315_v12, 4 }
  0xef   :  { %v317_v40 = vadd.f32 %v316_v39, %v315_v12 }
  0xf1   :  { %v318_v42 = vrot.slane %v317_v40, 2 }
  0xf3   :  { %v319_v20 = vadd.f32 %v318_v42, %v317_v40 }
  0xf5   :  { %v320_v44 = vrot.slane %v319_v20, 1 }
  0xf7   :  { %v321_v0 = vadd.f32 %v320_v44, %v319_v20 }
  0xf9   :  { %397 = vpush %v321_v0 }
  0xfa   :  { %399 = vpush %v343_v41 }
 0x12a   :  { %s398_s30 = spop %397 }
 0x12b   :  { %v323_v45 = vstv %s398_s30  ;;  %s400_s9 = spop %399 }
 0x12c   :  { %324 = vst.msk [vmem:[#allocation4] sm:$0x1] %vm82_vm5, %v323_v45  ;;  %v345_v46 = vstv %s400_s9 }
 0x12d   :  { %346 = vst.msk [vmem:[#allocation6] sm:$0x1] %vm82_vm5, %v345_v46  ;;  %368 = dma.vmem_to_hbm [thread:$0]  %s364_s21, 16, %s366_s24, [#allocation5]  }
 0x12e   :  { %379 = dma.vmem_to_hbm [thread:$0]  %s375_s26, 16, %s377_s29, [#allocation5]  }
 0x12f   :  { %505 = dma.done.wait [#allocation3], 16  }
 0x130   :  { %506 = vsyncadd [#allocation3], 4294967280 }
 0x131   :  { %507 = dma.done.wait [#allocation5], 32  }
 0x132   :  { %508 = vsyncadd [#allocation5], 4294967264 }
 0x133   :  { %392 = vsyncpa [#allocation3], 1 }
 0x134   :  { %393 = vsyncpa [#allocation5], 1 }

</bundles_post_ra>
